<compile_context>
chip_gen: v6e
topology: v6e:2x2x1
jax: 0.10.0
libtpu: 0.0.40
codegen_flags: <defaults>
</compile_context>

<pallas_src>
import numpy as np
import jax
import jax.numpy as jnp
from jax.experimental import pallas as pl
from jax.experimental.pallas import tpu as pltpu


def _sublane_multiple(dtype) -> int:
    """Rows per packed sublane tile for this dtype (8 f32 / 16 bf16 / 32 i8)."""
    itemsize = jnp.dtype(dtype).itemsize
    return max(8, 32 // max(itemsize, 1))


def _round_up(x: int, m: int) -> int:
    return ((x + m - 1) // m) * m


def _vmem_capacity_bytes() -> int:
    """Physical VMEM of the local chip; conservative fallback if unknown."""
    try:
        return int(pltpu.get_tpu_info().vmem_capacity_bytes)
    except Exception:
        return 64 * 1024 * 1024          # v7x per-TensorCore VMEM (smallest)


def _pipeline_budget_bytes(vmem_cap: int) -> int:
    """Double-buffered working-set budget for the tiled path.

    ~1/3 of physical VMEM, capped at 28 MiB: big enough to sit on the
    tiled-copy roofline plateau (>=85% of HBM BW needs ~512-row f32 tiles),
    small enough to leave headroom for Mosaic internal scratch on v7x (64 MiB
    physical) while staying generous on v5e/v6e (128 MiB physical).
    """
    return int(min(max(vmem_cap // 3, 8 << 20), 28 << 20))


def _choose_tile_rows(outer: int, total_width: int, dtype, budget: int) -> int:
    """Pick a sublane-aligned row tile under `budget`, keeping >=2 grid steps."""
    itemsize = jnp.dtype(dtype).itemsize
    sublane = _sublane_multiple(dtype)
    per_row = 4 * total_width * itemsize   # 2 bufs x (inputs + output) per row
    tile = max(budget // max(per_row, 1), 1)
    # Keep >= 4 grid steps (>= 2 when outer is small) so the pipeline has
    # something to overlap and v7x's two TensorCores both get work.
    if outer >= 4 * sublane:
        tile = min(tile, _round_up(pl.cdiv(outer, 4), sublane))
    elif outer >= 2 * sublane:
        tile = min(tile, _round_up(pl.cdiv(outer, 2), sublane))
    if tile >= outer:
        return outer                       # full extent: always a legal block
    tile = max(sublane, (tile // sublane) * sublane)
    return outer if tile >= outer else tile


def _make_tiled_concat_kernel(widths, offsets):
    """Kernel that writes N input tiles into static lane offsets of out tile."""
    def kernel(*refs):
        out_ref = refs[-1]
        in_refs = refs[:-1]
        for in_ref, off, w in zip(in_refs, offsets, widths):
            # Static lane slice; stores are lane-dense (unmasked) whenever
            # off / w are multiples of 128 (true for the channel-concat demo).
            out_ref[:, off:off + w] = in_ref[...]
    return kernel


def _make_dma_concat_kernel(widths, offsets, n_in):
    """Kernel that DMAs every input HBM chunk into its output lane window."""
    def kernel(*refs):
        in_refs = refs[:n_in]
        out_ref = refs[n_in]
        sem = refs[n_in + 1]
        copies = []
        for i, (in_ref, off, w) in enumerate(zip(in_refs, offsets, widths)):
            cp = pltpu.make_async_copy(in_ref, out_ref.at[:, off:off + w],
                                       sem.at[i])
            cp.start()
            copies.append(cp)
        for cp in copies:
            cp.wait()
    return kernel


def pallas_cat(xs, dim):
    """torch.cat(xs, dim) as a Pallas TPU kernel (tiled copy or direct DMA)."""
    xs = list(xs)
    assert len(xs) >= 1, "need at least one tensor"
    if len(xs) == 1:
        return xs[0]

    ndim = xs[0].ndim
    dim = dim % ndim
    for x in xs:
        assert x.ndim == ndim
        assert x.shape[:dim] == xs[0].shape[:dim]
        assert x.shape[dim + 1:] == xs[0].shape[dim + 1:]

    # torch.cat promotes mixed dtypes; mirror that with JAX promotion rules.
    dtype = jnp.result_type(*xs)
    xs = [x if x.dtype == dtype else x.astype(dtype) for x in xs]

    ref_shape = xs[0].shape
    out_shape = (ref_shape[:dim]
                 + (int(sum(x.shape[dim] for x in xs)),)
                 + ref_shape[dim + 1:])

    outer = int(np.prod(ref_shape[:dim])) if dim > 0 else 1
    rest = int(np.prod(ref_shape[dim + 1:])) if dim + 1 < ndim else 1

    # Flatten each input to (outer, n_i * rest); drop zero-width inputs.
    xs2, widths = [], []
    for x in xs:
        w = int(x.shape[dim]) * rest
        if w == 0:
            continue
        xs2.append(x.reshape(outer, w))
        widths.append(w)
    total = int(sum(widths))

    if outer == 0 or total == 0:
        return jnp.zeros(out_shape, dtype=dtype)

    offsets, acc = [], 0
    for w in widths:
        offsets.append(acc)
        acc += w

    itemsize = jnp.dtype(dtype).itemsize
    sublane = _sublane_multiple(dtype)
    total_bytes = outer * total * itemsize

    vmem_cap = _vmem_capacity_bytes()
    budget = _pipeline_budget_bytes(vmem_cap)
    tile_r = _choose_tile_rows(outer, total, dtype, budget)
    working = 4 * total * tile_r * itemsize        # double-buffered footprint
    tiled_fits = working + (2 << 20) <= vmem_cap - (4 << 20)

    # DMA windows for sub-32-bit dtypes must start/end on 32-bit boundaries.
    dma_aligned = all((off * itemsize) % 4 == 0 and (w * itemsize) % 4 == 0
                      for off, w in zip(offsets, widths))

    small_outer = outer < 2 * sublane    # < 2 sublane tiles -> masked vld/vst
    narrow = total < 128                 # sub-lane-width output block
    prefer_dma = small_outer or narrow or not tiled_fits

    cost = pl.CostEstimate(flops=0, transcendentals=0,
                           bytes_accessed=2 * total_bytes)

    if prefer_dma and dma_aligned:
        # Pure DMA-engine concat: the TensorCore only starts/waits the copies.
        out2 = pl.pallas_call(
            _make_dma_concat_kernel(widths, offsets, len(xs2)),
            out_shape=jax.ShapeDtypeStruct((outer, total), dtype),
            in_specs=[pl.BlockSpec(memory_space=pl.ANY)] * len(xs2),
            out_specs=pl.BlockSpec(memory_space=pl.ANY),
            scratch_shapes=[pltpu.SemaphoreType.DMA((len(xs2),))],
            cost_estimate=cost,
        )(*xs2)
        return out2.reshape(out_shape)

    if not tiled_fits:
        # TODO(synk): add a lane-axis split for extremely wide rows with
        # sub-32-bit-unaligned offsets; fall back to XLA concat rather than
        # compile a kernel guaranteed to exceed scoped VMEM.
        return jnp.concatenate(xs, axis=dim)

    grid = (pl.cdiv(outer, tile_r),)
    vmem_limit = int(min(vmem_cap - (4 << 20),
                         max(working + (4 << 20), 16 << 20)))

    in_specs = [pl.BlockSpec((tile_r, w), lambda r: (r, 0)) for w in widths]
    out_specs = pl.BlockSpec((tile_r, total), lambda r: (r, 0))

    out2 = pl.pallas_call(
        _make_tiled_concat_kernel(widths, offsets),
        out_shape=jax.ShapeDtypeStruct((outer, total), dtype),
        grid=grid,
        in_specs=in_specs,
        out_specs=out_specs,
        compiler_params=pltpu.CompilerParams(
            dimension_semantics=("parallel",),
            vmem_limit_bytes=vmem_limit),
        cost_estimate=cost,
    )(*xs2)
    return out2.reshape(out_shape)


class TableModule:
    """JAX/Pallas counterpart of the PyTorch TableModule (forward = cat)."""

    def __call__(self, x, dim):
        return pallas_cat(x, dim)

    forward = __call__


if __name__ == "__main__":
    key = jax.random.PRNGKey(0)
    k1, k2, k3, k4, k5 = jax.random.split(key, 5)

    mod = TableModule()

    # 1) Small NCHW channel concat (outer=2 -> direct HBM->HBM DMA path).
    a = jax.random.normal(k1, (2, 4, 16, 16), dtype=jnp.float32)
    b = jax.random.normal(k2, (2, 3, 16, 16), dtype=jnp.float32)
    c = jax.random.normal(k3, (2, 5, 16, 16), dtype=jnp.float32)
    y = jax.block_until_ready(mod([a, b, c], 1))
    np.testing.assert_array_equal(
        np.asarray(y), np.asarray(jnp.concatenate([a, b, c], axis=1)))

    # 2) Concat along the last dim (narrow, non-128-aligned widths -> DMA path).
    y2 = jax.block_until_ready(mod([a, a], 3))
    np.testing.assert_array_equal(
        np.asarray(y2), np.asarray(jnp.concatenate([a, a], axis=3)))

    # 3) bf16 channel concat (DMA path with 32-bit-aligned packed offsets).
    ab, bb = a.astype(jnp.bfloat16), b.astype(jnp.bfloat16)
    y3 = jax.block_until_ready(mod([ab, bb], 1))
    np.testing.assert_array_equal(
        np.asarray(y3.astype(jnp.float32)),
        np.asarray(jnp.concatenate([ab, bb], axis=1).astype(jnp.float32)))

    # 4) Larger batch -> tiled, software-pipelined BlockSpec path (grid >= 2).
    d = jax.random.normal(k4, (16, 4, 16, 16), dtype=jnp.float32)
    e = jax.random.normal(k5, (16, 3, 16, 16), dtype=jnp.float32)
    y4 = jax.block_until_ready(mod([d, e], 1))
    np.testing.assert_array_equal(
        np.asarray(y4), np.asarray(jnp.concatenate([d, e], axis=1)))

    # 5) dim=0 concat (outer==1, fully contiguous chunks -> one DMA per input).
    y5 = jax.block_until_ready(mod([a, a], 0))
    np.testing.assert_array_equal(
        np.asarray(y5), np.asarray(jnp.concatenate([a, a], axis=0)))

    # 6) Mixed-dtype concat exercises torch-style promotion (f32 + bf16 -> f32).
    y6 = jax.block_until_ready(mod([a, bb], 1))
    np.testing.assert_array_equal(
        np.asarray(y6), np.asarray(jnp.concatenate([a, bb], axis=1)))

    print("KERNEL_OK")
</pallas_src>

<mosaic_0001>
module attributes {stable_mosaic.version = 11 : i64} {
  func.func @kernel(%arg0: memref<2x1024xf32, #tpu.memory_space<any>>, %arg1: memref<2x768xf32, #tpu.memory_space<any>>, %arg2: memref<2x1280xf32, #tpu.memory_space<any>>, %arg3: memref<2x3072xf32, #tpu.memory_space<any>>, %arg4: memref<3x!tpu.dma_semaphore, #tpu.memory_space<semaphore_mem>>) attributes {dimension_semantics = [], scalar_prefetch = 0 : i64, scratch_operands = 1 : i64, tpu.core_type = #tpu.core_type<tc>} {
    %c0_i32 = arith.constant 0 : i32
    %c0_i32_0 = arith.constant 0 : i32
    %c0_i32_1 = arith.constant 0 : i32
    %0 = tpu.memref_slice %arg3[%c0_i32_0, %c0_i32_1] : memref<2x3072xf32, #tpu.memory_space<any>> -> memref<2x1024xf32, #tpu.memory_space<any>>
    %1 = tpu.memref_slice %arg4[%c0_i32] : memref<3x!tpu.dma_semaphore, #tpu.memory_space<semaphore_mem>> -> memref<1x!tpu.dma_semaphore, #tpu.memory_space<semaphore_mem>>
    %2 = tpu.memref_squeeze %1 : memref<1x!tpu.dma_semaphore, #tpu.memory_space<semaphore_mem>> -> memref<!tpu.dma_semaphore, #tpu.memory_space<semaphore_mem>>
    tpu.enqueue_dma source(%arg0 : memref<2x1024xf32, #tpu.memory_space<any>>) target(%0 : memref<2x1024xf32, #tpu.memory_space<any>>) target_semaphore(%2 : memref<!tpu.dma_semaphore, #tpu.memory_space<semaphore_mem>>)
    %c1_i32 = arith.constant 1 : i32
    %c0_i32_2 = arith.constant 0 : i32
    %c1024_i32 = arith.constant 1024 : i32
    %3 = tpu.memref_slice %arg3[%c0_i32_2, %c1024_i32] : memref<2x3072xf32, #tpu.memory_space<any>> -> memref<2x768xf32, #tpu.memory_space<any>>
    %4 = tpu.memref_slice %arg4[%c1_i32] : memref<3x!tpu.dma_semaphore, #tpu.memory_space<semaphore_mem>> -> memref<1x!tpu.dma_semaphore, #tpu.memory_space<semaphore_mem>>
    %5 = tpu.memref_squeeze %4 : memref<1x!tpu.dma_semaphore, #tpu.memory_space<semaphore_mem>> -> memref<!tpu.dma_semaphore, #tpu.memory_space<semaphore_mem>>
    tpu.enqueue_dma source(%arg1 : memref<2x768xf32, #tpu.memory_space<any>>) target(%3 : memref<2x768xf32, #tpu.memory_space<any>>) target_semaphore(%5 : memref<!tpu.dma_semaphore, #tpu.memory_space<semaphore_mem>>)
    %c2_i32 = arith.constant 2 : i32
    %c0_i32_3 = arith.constant 0 : i32
    %c1792_i32 = arith.constant 1792 : i32
    %6 = tpu.memref_slice %arg3[%c0_i32_3, %c1792_i32] : memref<2x3072xf32, #tpu.memory_space<any>> -> memref<2x1280xf32, #tpu.memory_space<any>>
    %7 = tpu.memref_slice %arg4[%c2_i32] : memref<3x!tpu.dma_semaphore, #tpu.memory_space<semaphore_mem>> -> memref<1x!tpu.dma_semaphore, #tpu.memory_space<semaphore_mem>>
    %8 = tpu.memref_squeeze %7 : memref<1x!tpu.dma_semaphore, #tpu.memory_space<semaphore_mem>> -> memref<!tpu.dma_semaphore, #tpu.memory_space<semaphore_mem>>
    tpu.enqueue_dma source(%arg2 : memref<2x1280xf32, #tpu.memory_space<any>>) target(%6 : memref<2x1280xf32, #tpu.memory_space<any>>) target_semaphore(%8 : memref<!tpu.dma_semaphore, #tpu.memory_space<semaphore_mem>>)
    %c0_i32_4 = arith.constant 0 : i32
    %c0_i32_5 = arith.constant 0 : i32
    %c0_i32_6 = arith.constant 0 : i32
    %9 = tpu.memref_slice %arg3[%c0_i32_5, %c0_i32_6] : memref<2x3072xf32, #tpu.memory_space<any>> -> memref<2x1024xf32, #tpu.memory_space<any>>
    %10 = tpu.memref_slice %arg4[%c0_i32_4] : memref<3x!tpu.dma_semaphore, #tpu.memory_space<semaphore_mem>> -> memref<1x!tpu.dma_semaphore, #tpu.memory_space<semaphore_mem>>
    %11 = tpu.memref_squeeze %10 : memref<1x!tpu.dma_semaphore, #tpu.memory_space<semaphore_mem>> -> memref<!tpu.dma_semaphore, #tpu.memory_space<semaphore_mem>>
    tpu.wait_dma2 semaphore(%11 : memref<!tpu.dma_semaphore, #tpu.memory_space<semaphore_mem>>) src(%arg0 : memref<2x1024xf32, #tpu.memory_space<any>>) dst(%9 : memref<2x1024xf32, #tpu.memory_space<any>>)
    %c1_i32_7 = arith.constant 1 : i32
    %c0_i32_8 = arith.constant 0 : i32
    %c1024_i32_9 = arith.constant 1024 : i32
    %12 = tpu.memref_slice %arg3[%c0_i32_8, %c1024_i32_9] : memref<2x3072xf32, #tpu.memory_space<any>> -> memref<2x768xf32, #tpu.memory_space<any>>
    %13 = tpu.memref_slice %arg4[%c1_i32_7] : memref<3x!tpu.dma_semaphore, #tpu.memory_space<semaphore_mem>> -> memref<1x!tpu.dma_semaphore, #tpu.memory_space<semaphore_mem>>
    %14 = tpu.memref_squeeze %13 : memref<1x!tpu.dma_semaphore, #tpu.memory_space<semaphore_mem>> -> memref<!tpu.dma_semaphore, #tpu.memory_space<semaphore_mem>>
    tpu.wait_dma2 semaphore(%14 : memref<!tpu.dma_semaphore, #tpu.memory_space<semaphore_mem>>) src(%arg1 : memref<2x768xf32, #tpu.memory_space<any>>) dst(%12 : memref<2x768xf32, #tpu.memory_space<any>>)
    %c2_i32_10 = arith.constant 2 : i32
    %c0_i32_11 = arith.constant 0 : i32
    %c1792_i32_12 = arith.constant 1792 : i32
    %15 = tpu.memref_slice %arg3[%c0_i32_11, %c1792_i32_12] : memref<2x3072xf32, #tpu.memory_space<any>> -> memref<2x1280xf32, #tpu.memory_space<any>>
    %16 = tpu.memref_slice %arg4[%c2_i32_10] : memref<3x!tpu.dma_semaphore, #tpu.memory_space<semaphore_mem>> -> memref<1x!tpu.dma_semaphore, #tpu.memory_space<semaphore_mem>>
    %17 = tpu.memref_squeeze %16 : memref<1x!tpu.dma_semaphore, #tpu.memory_space<semaphore_mem>> -> memref<!tpu.dma_semaphore, #tpu.memory_space<semaphore_mem>>
    tpu.wait_dma2 semaphore(%17 : memref<!tpu.dma_semaphore, #tpu.memory_space<semaphore_mem>>) src(%arg2 : memref<2x1280xf32, #tpu.memory_space<any>>) dst(%15 : memref<2x1280xf32, #tpu.memory_space<any>>)
    return
  }
}

</mosaic_0001>

<bundles_post_ra>
// kernel: tpu_custom_call.1
= control target key start
LH: loop header
LB: loop body
LE: loop exit
PB: predicated region body
PF: predicated region fallthrough
CT: control target
= control target key end

     0   :  { %s77_s15 = smov [#allocation2]   ;;  %s78_s16 = smov 131072   ;;  %s120_s0 = inlined_call_operand.hbm [shape: f32[2,1024], index: 0, kind: input, shape index: {}]   ;;  %s121_s3 = inlined_call_operand.hbm [shape: f32[2,3072], index: 3, kind: output, shape index: {}]   ;;  %s122_s1 = inlined_call_operand.hbm [shape: f32[2,768], index: 1, kind: input, shape index: {}]   ;;  %s123_s2 = inlined_call_operand.hbm [shape: f32[2,1280], index: 2, kind: input, shape index: {}]  }
   0x1   :  { %s15_s14 = scalar_lea.hbm %s121_s3, 256  ;;  %s79_s17 = smov 0  }
   0x2   :  { %14 = dma.general %s120_s0, 256, %s121_s3, %s77_s15, %s78_s16, [#allocation4], %s79_s17, 0  }
   0x3   :  { %s24_s24 = scalar_lea.hbm %s121_s3, 448  ;;  %s80_s25 = smov [#allocation2 + $0x1]  }
   0x4   :  { %23 = dma.general %s122_s1, 192, %s15_s14, %s80_s25, %s78_s16, [#allocation6], %s79_s17, 0  }
   0x5   :  { %s81_s28 = smov [#allocation2 + $0x2]  }
   0x6   :  { %32 = dma.general %s123_s2, 320, %s24_s24, %s81_s28, %s78_s16, [#allocation8], %s79_s17, 0  }
   0x7   :  { %71 = dma.done.wait [#allocation2], 256 }
   0x8   :  { %72 = vsyncadd [#allocation2], 4294967040 }
   0x9   :  { %73 = dma.done.wait [#allocation2 + $0x1], 192 }
   0xa   :  { %74 = vsyncadd [#allocation2 + $0x1], 4294967104 }
   0xb   :  { %75 = dma.done.wait [#allocation2 + $0x2], 320 }
   0xc   :  { %76 = vsyncadd [#allocation2 + $0x2], 4294966976 }
   0xd   :  { %43 = vsyncmov [#allocation2] }
  0x10   :  { %s44_s0 = vpop.sfrf %43 }
  0x11   :  { %p63_p0 = scmp.ne.s32.totalorder %s44_s0, 0 }
  0x13   :  { %48 = shalt.err (%p63_p0)  }
  0x14   :  { %50 = vsyncmov [#allocation2 + $0x1] }
  0x17   :  { %s51_s3 = vpop.sfrf %50 }
  0x18   :  { %p64_p1 = scmp.ne.s32.totalorder %s51_s3, 0 }
  0x1a   :  { %55 = shalt.err (%p64_p1)  }
  0x1b   :  { %57 = vsyncmov [#allocation2 + $0x2] }
  0x1e   :  { %s58_s1 = vpop.sfrf %57 }
  0x1f   :  { %p65_p2 = scmp.ne.s32.totalorder %s58_s1, 0 }
  0x21   :  { %62 = shalt.err (%p65_p2)  }

</bundles_post_ra>
